<compile_context>
chip_gen: v7x
topology: tpu7x:2x2x1
jax: 0.10.0
libtpu: 0.0.40
codegen_flags: <defaults>
</compile_context>

<pallas_src>
import jax
import jax.numpy as jnp
from jax.experimental import pallas as pl
from jax.experimental.pallas import tpu as pltpu

_LANE = 128
_DEFAULT_BLOCK_ROWS = 128 * 1024  # ~2 MB of feature-major f32 input per step.


def _policy_kernel(w_ref, xt_ref, ot_ref):
    # w_ref:  (4,)     f32 in SMEM  (the linear weights, scalar reads)
    # xt_ref: (4, TB)  f32 in VMEM  (states, feature-major: batch on lanes)
    # ot_ref: (1, TB)  f32 in VMEM  (lane-dense output row)
    x = xt_ref[...]  # (4, TB)
    o = (w_ref[0] * x[0:1, :]
         + w_ref[1] * x[1:2, :]
         + w_ref[2] * x[2:3, :]
         + w_ref[3] * x[3:4, :])  # (1, TB), pure VPU scalar*vector FMAs
    ot_ref[...] = o


def policy_forward(s: jax.Array, weight: jax.Array, *, block_rows: int | None = None) -> jax.Array:
    """Equivalent of Policy.forward: s @ weight.T, no bias.

    s:      (B, 4) float32
    weight: (1, 4) float32  (nn.Linear(4, 1, bias=False).weight layout)
    returns (B, 1) float32
    """
    assert s.ndim == 2 and s.shape[1] == 4, s.shape
    assert weight.shape == (1, 4), weight.shape
    B = s.shape[0]

    # Pick a lane-aligned batch tile; cap it at the (lane-padded) batch size.
    tb = _DEFAULT_BLOCK_ROWS if block_rows is None else block_rows
    tb = max(_LANE, (tb // _LANE) * _LANE)
    b_lanes = pl.cdiv(B, _LANE) * _LANE
    tb = min(tb, b_lanes)
    b_pad = pl.cdiv(B, tb) * tb

    # Layout plumbing in the wrapper: zero-pad the batch to a multiple of the
    # tile and go feature-major so the batch dimension sits on lanes.
    if b_pad != B:
        s = jnp.pad(s, ((0, b_pad - B), (0, 0)))
    xt = s.T                      # (4, b_pad)
    w_flat = weight.reshape(4)    # (4,) -> SMEM scalars

    grid = (b_pad // tb,)
    out_t = pl.pallas_call(
        _policy_kernel,
        out_shape=jax.ShapeDtypeStruct((1, b_pad), s.dtype),
        grid=grid,
        in_specs=[
            # Whole (4,) weight vector in SMEM; read as scalars in the kernel.
            pl.BlockSpec(memory_space=pltpu.MemorySpace.SMEM),
            # Feature-major states: block second-last dim 4 == full array dim,
            # last dim tb is a multiple of 128 -> valid tiling, lane-dense.
            pl.BlockSpec((4, tb), lambda i: (0, i)),
        ],
        out_specs=pl.BlockSpec((1, tb), lambda i: (0, i)),
        compiler_params=pltpu.CompilerParams(
            dimension_semantics=("parallel",),
        ),
    )(w_flat, xt)

    # Back to the public (B, 1) layout, dropping the padded tail rows.
    return out_t[0, :B].reshape(B, 1)


if __name__ == "__main__":
    key = jax.random.PRNGKey(0)
    k_w, k_s = jax.random.split(key)

    # Deterministic parameter init, matching nn.Linear(4, 1, bias=False)
    # default: U(-1/sqrt(fan_in), 1/sqrt(fan_in)) with fan_in = 4.
    bound = 1.0 / jnp.sqrt(4.0)
    weight = jax.random.uniform(k_w, (1, 4), jnp.float32, -bound, bound)

    # CartPole observation has 4 dims; small batch of 8 states.
    s_small = jax.random.normal(k_s, (8, 4), jnp.float32)
    out_small = jax.block_until_ready(policy_forward(s_small, weight))
    ref_small = s_small @ weight.T
    assert out_small.shape == (8, 1), out_small.shape
    assert jnp.allclose(out_small, ref_small, atol=1e-5, rtol=1e-5)

    # Ragged, multi-tile case to exercise batch tiling + tail padding.
    s_big = jax.random.normal(k_s, (300, 4), jnp.float32)
    out_big = jax.block_until_ready(policy_forward(s_big, weight, block_rows=128))
    ref_big = s_big @ weight.T
    assert out_big.shape == (300, 1), out_big.shape
    assert jnp.allclose(out_big, ref_big, atol=1e-5, rtol=1e-5)

    print("KERNEL_OK")
</pallas_src>

<mosaic_0001>
module attributes {stable_mosaic.version = 11 : i64} {
  func.func @_policy_kernel(%arg0: i32, %arg1: memref<4xf32, #tpu.memory_space<smem>>, %arg2: memref<4x128xf32, #tpu.memory_space<vmem>>, %arg3: memref<1x128xf32, #tpu.memory_space<vmem>>) attributes {dimension_semantics = [#tpu.dimension_semantics<parallel>], iteration_bounds = array<i64: 1>, scalar_prefetch = 0 : i64, scratch_operands = 0 : i64, tpu.core_type = #tpu.core_type<tc>, window_params = [{transform_indices = @transform_0, window_bounds = array<i64: 4>}, {transform_indices = @transform_1, window_bounds = array<i64: 4, 128>}, {transform_indices = @transform_2, window_bounds = array<i64: 1, 128>}]} {
    %c0 = arith.constant 0 : index
    %c0_0 = arith.constant 0 : index
    %0 = vector.load %arg2[%c0, %c0_0] : memref<4x128xf32, #tpu.memory_space<vmem>>, vector<4x128xf32>
    %c0_1 = arith.constant 0 : index
    %1 = memref.load %arg1[%c0_1] : memref<4xf32, #tpu.memory_space<smem>>
    %2 = vector.extract_strided_slice %0 {offsets = [0, 0], sizes = [1, 128], strides = [1, 1]} : vector<4x128xf32> to vector<1x128xf32>
    %3 = vector.broadcast %1 : f32 to vector<1x128xf32>
    %4 = arith.mulf %3, %2 : vector<1x128xf32>
    %c1 = arith.constant 1 : index
    %5 = memref.load %arg1[%c1] : memref<4xf32, #tpu.memory_space<smem>>
    %6 = vector.extract_strided_slice %0 {offsets = [1, 0], sizes = [1, 128], strides = [1, 1]} : vector<4x128xf32> to vector<1x128xf32>
    %7 = vector.broadcast %5 : f32 to vector<1x128xf32>
    %8 = arith.mulf %7, %6 : vector<1x128xf32>
    %9 = arith.addf %4, %8 : vector<1x128xf32>
    %c2 = arith.constant 2 : index
    %10 = memref.load %arg1[%c2] : memref<4xf32, #tpu.memory_space<smem>>
    %11 = vector.extract_strided_slice %0 {offsets = [2, 0], sizes = [1, 128], strides = [1, 1]} : vector<4x128xf32> to vector<1x128xf32>
    %12 = vector.broadcast %10 : f32 to vector<1x128xf32>
    %13 = arith.mulf %12, %11 : vector<1x128xf32>
    %14 = arith.addf %9, %13 : vector<1x128xf32>
    %c3 = arith.constant 3 : index
    %15 = memref.load %arg1[%c3] : memref<4xf32, #tpu.memory_space<smem>>
    %16 = vector.extract_strided_slice %0 {offsets = [3, 0], sizes = [1, 128], strides = [1, 1]} : vector<4x128xf32> to vector<1x128xf32>
    %17 = vector.broadcast %15 : f32 to vector<1x128xf32>
    %18 = arith.mulf %17, %16 : vector<1x128xf32>
    %19 = arith.addf %14, %18 : vector<1x128xf32>
    %c0_2 = arith.constant 0 : index
    %c0_3 = arith.constant 0 : index
    %20 = vector.load %arg3[%c0_2, %c0_3] : memref<1x128xf32, #tpu.memory_space<vmem>>, vector<1x128xf32>
    tpu.vector_store %arg3[%c0_2, %c0_3], %19 {strides = array<i32>} : memref<1x128xf32, #tpu.memory_space<vmem>>, vector<1x128xf32>,
    return
  }
  func.func @transform_0(%arg0: i32) -> i32 {
    %c0_i32 = arith.constant 0 : i32
    %c0_i32_0 = arith.constant 0 : i32
    return %c0_i32 : i32
  }
  func.func @transform_1(%arg0: i32) -> (i32, i32) {
    %c0_i32 = arith.constant 0 : i32
    %c0_i32_0 = arith.constant 0 : i32
    return %c0_i32, %arg0 : i32, i32
  }
  func.func @transform_2(%arg0: i32) -> (i32, i32) {
    %c0_i32 = arith.constant 0 : i32
    %c0_i32_0 = arith.constant 0 : i32
    return %c0_i32, %arg0 : i32, i32
  }
}

</mosaic_0001>

<bundles_post_ra>
// kernel: tpu_custom_call.1
= control target key start
LH: loop header
LB: loop body
LE: loop exit
PB: predicated region body
PF: predicated region fallthrough
CT: control target
= control target key end

     0   :  { %7 = vsyncpa [#allocation5], 0  ;;  %s197_s0 = inlined_call_operand.hbm [shape: f32[4], index: 0, kind: input, shape index: {}]   ;;  %s198_s1 = inlined_call_operand.hbm [shape: f32[4,128], index: 1, kind: input, shape index: {}]   ;;  %s199_s2 = inlined_call_operand.hbm [shape: f32[1,128], index: 2, kind: output, shape index: {}]  }
   0x1   :  { %8 = vsyncpa [#allocation3], 0 }
   0x2   :  { %9 = vsyncpa [#allocation4], 0  ;;  %s83_s11 = scalar_lea.hbm %s197_s0, 16 }
   0x3   :  { %p84_p0 = scmp.ne.s32.totalorder %s197_s0, %s83_s11  ;;  %p87_p1 = scmp.lt.u32.totalorder %s83_s11, %s197_s0 }
   0x5   :  { %p89_p2 = pnand %p87_p1, %p84_p0 }
   0x7   :  { %92 = shalt.err (!%p89_p2)
}
   0x8   :  { %s143_s16 = smov [#allocation2]   ;;  %s144_s19 = smov [#allocation6]  }
   0x9   :  { %17 = dma.hbm_to_smem %s197_s0, 16, %s143_s16, [#allocation5]  }
   0xa   :  { %s24_s20 = sshll.u32 %s144_s19, 4  ;;  %s93_s23 = scalar_lea.hbm %s198_s1, 64  ;;  %s25_s20 = int_to_ptr.vmem [resolvable:$true] %s24_s20 }
   0xb   :  { %p94_p3 = scmp.ne.s32.totalorder %s198_s1, %s93_s23  ;;  %p97_p4 = scmp.lt.u32.totalorder %s93_s23, %s198_s1 }
   0xd   :  { %p99_p5 = pnand %p97_p4, %p94_p3 }
   0xf   :  { %102 = shalt.err (!%p99_p5)
}
  0x10   :  { %s103_s28 = scalar_lea.vmem %s25_s20, 64  ;;  %p108_p7 = scmp.lt.s32.totalorder %s25_s20, %s25_s20 }
  0x11   :  { %p104_p6 = scmp.ne.s32.totalorder %s25_s20, %s103_s28  ;;  %p109_p8 = scmp.lt.s32.totalorder %s103_s28, %s103_s28 }
  0x13   :  { %p110_p9 = por %p109_p8, %p108_p7 }
  0x15   :  { %p111_p10 = pnand %p110_p9, %p104_p6 }
  0x17   :  { %114 = shalt.err (!%p111_p10)
}
  0x18   :  { %27 = dma.hbm_to_vmem [thread:$0]  %s198_s1, 64, %s25_s20, [#allocation3]  }
  0x19   :  { %137 = dma.done.wait [#allocation5], 16  }
  0x1a   :  { %138 = vsyncadd [#allocation5], 4294967280 }
  0x1b   :  { %139 = dma.done.wait [#allocation3], 64  }
  0x1c   :  { %140 = vsyncadd [#allocation3], 4294967232 }
  0x1d   :  { %34 = sfence }
  0x1e   :  { %s36_s30 = sld [smem:[#allocation2]]  ;;  %s77_s3 = sld [smem:[#allocation2 + $0x1]]  ;;  %v35_v0 = vld [vmem:[#allocation6] sm:$0xf] }
  0x1f   :  { %s78_s4 = sld [smem:[#allocation2 + $0x2]]  ;;  %s79_s5 = sld [smem:[#allocation2 + $0x3]] }
  0x20   :  { %s145_s1 = smov [#allocation7]  }
  0x21   :  { %s67_s6 = sshll.u32 %s145_s1, 4  ;;  %s68_s6 = int_to_ptr.vmem [resolvable:$true] %s67_s6 }
  0x22   :  { %s115_s7 = scalar_lea.vmem %s68_s6, 16  ;;  %s119_s8 = scalar_lea.vmem %s68_s6, 32 }
  0x23   :  { %p116_p11 = scmp.ne.s32.totalorder %s68_s6, %s115_s7  ;;  %p120_p12 = scmp.lt.s32.totalorder %s68_s6, %s68_s6 }
  0x24   :  { %v37_v1 = vstv %s36_s30  ;;  %v40_v2 = vstv %s77_s3  ;;  %p121_p13 = scmp.lt.s32.totalorder %s119_s8, %s115_s7 }
  0x25   :  { %v38_v3 = vmul.f32 %v37_v1, %v35_v0  ;;  %v41_v4 = vmul.f32 %v40_v2, %v35_v0  ;;  %v47_v5 = vstv %s78_s4  ;;  %v54_v6 = vstv %s79_s5 }
  0x26   :  { %v48_v7 = vmul.f32 %v47_v5, %v35_v0  ;;  %v55_v8 = vmul.f32 %v54_v6, %v35_v0  ;;  %p122_p0 = por %p121_p13, %p120_p12 }
  0x27   :  { %v43_v9 = vrot.slane %v41_v4, 1 }
  0x28   :  { %v50_v10 = vrot.slane %v48_v7, 2  ;;  %v57_v12 = vrot.slane %v55_v8, 3  ;;  %p123_p1 = pnand %p122_p0, %p116_p11 }
  0x29   :  { %v45_v11 = vadd.f32 %v43_v9, %v38_v3 }
  0x2b   :  { %v52_v13 = vadd.f32 %v50_v10, %v45_v11 }
  0x2d   :  { %v59_v14 = vadd.f32 %v57_v12, %v52_v13 }
  0x2f   :  { %60 = vst [vmem:[#allocation7] sm:$0x1] %v59_v14 }
  0x30   :  { %126 = shalt.err (!%p123_p1)
}
  0x31   :  { %s127_s11 = scalar_lea.hbm %s199_s2, 16 }
  0x32   :  { %p128_p2 = scmp.ne.s32.totalorder %s199_s2, %s127_s11  ;;  %p131_p3 = scmp.lt.u32.totalorder %s127_s11, %s199_s2 }
  0x34   :  { %p133_p4 = pnand %p131_p3, %p128_p2 }
  0x36   :  { %136 = shalt.err (!%p133_p4)
}
  0x37   :  { %70 = dma.vmem_to_hbm [thread:$0]  %s68_s6, 16, %s199_s2, [#allocation4]  }
  0x38   :  { %141 = dma.done.wait [#allocation4], 16  }
  0x39   :  { %142 = vsyncadd [#allocation4], 4294967280 }
  0x3a   :  { %74 = vsyncpa [#allocation3], 1 }
  0x3b   :  { %75 = vsyncpa [#allocation4], 1 }
  0x3c   :  { %76 = vsyncpa [#allocation5], 1 }

</bundles_post_ra>
